<compile_context>
chip_gen: v5e
topology: v5e:2x2
jax: 0.10.0
libtpu: 0.0.40
codegen_flags: <defaults>
</compile_context>

<pallas_src>
import jax
import jax.numpy as jnp
from jax.experimental import pallas as pl
from jax.experimental.pallas import tpu as pltpu


O_PAD = 128  # lane-dense width for the final logits store (multiple of 128)


# ----------------------------- fused Pallas kernel ---------------------------

def make_fused_gcn_kernel(n_conv_layers):
    """Build a fused GCN forward kernel with a static unroll over conv layers.

    Ref order (all inputs first, then the single output):
      a_bd   : (BN, BN)   block-diagonal symmetric-normalized adjacency
      x      : (BN, Fin)  node features (batch flattened into rows)
      [w_i, b_i] * n_conv_layers
      pool   : (B, BN)    mean-readout matrix (1/N per node of each graph)
      w_mlp  : (H, O_PAD) zero-padded head weight
      b_mlp  : (1, O_PAD) zero-padded head bias
      out    : (B, O_PAD) log-softmax(logits, dim=0), padded columns harmless
    """

    def kernel(*refs):
        a = refs[0][...]
        h = refs[1][...]
        idx = 2
        for _ in range(n_conv_layers):                       # static unroll
            w = refs[idx][...]
            b = refs[idx + 1][...]
            idx += 2
            hw = jnp.dot(h, w, preferred_element_type=jnp.float32)     # (BN, Fout)
            agg = jnp.dot(a, hw, preferred_element_type=jnp.float32)   # (BN, Fout)
            h = jnp.maximum(agg + b, 0.0)                              # ReLU
        pool = refs[idx][...]
        w_mlp = refs[idx + 1][...]
        b_mlp = refs[idx + 2][...]
        o_ref = refs[idx + 3]

        hg = jnp.dot(pool, h, preferred_element_type=jnp.float32)          # (B, H) mean readout on MXU
        logits = jnp.dot(hg, w_mlp, preferred_element_type=jnp.float32) + b_mlp  # (B, O_PAD)
        # log_softmax over graph dim (axis=0) — matches F.log_softmax(..., dim=0)
        m = jnp.max(logits, axis=0, keepdims=True)
        lse = jnp.log(jnp.sum(jnp.exp(logits - m), axis=0, keepdims=True)) + m
        o_ref[...] = logits - lse

    return kernel


# --------------------------------- wrapper -----------------------------------

def gcn_forward(a_hat, h0, params):
    """params = {'layers': [(W, b), ...], 'mlp': (W, b)}. Returns (B, output_dim)."""
    B, N, f_in = h0.shape
    BN = B * N
    n_conv = len(params["layers"])
    w_mlp, b_mlp = params["mlp"]
    H, O = w_mlp.shape

    # --- cheap one-time prep (XLA side) ---
    # block-diagonal adjacency so per-graph aggregation becomes one matmul
    a_bd = jnp.einsum("gh,gij->gihj", jnp.eye(B, dtype=a_hat.dtype), a_hat).reshape(BN, BN)
    x = h0.reshape(BN, f_in)
    # mean readout as a (B, BN) pooling matmul (keeps the reduction on the MXU)
    pool = jnp.kron(jnp.eye(B, dtype=jnp.float32), jnp.full((1, N), 1.0 / N, jnp.float32))
    # pad head to a lane-dense 128-wide output; padded columns are exactly zero
    w_mlp_p = jnp.zeros((H, O_PAD), jnp.float32).at[:, :O].set(w_mlp)
    b_mlp_p = jnp.zeros((1, O_PAD), jnp.float32).at[:, :O].set(b_mlp)

    inputs = [a_bd, x]
    in_specs = [
        pl.BlockSpec((BN, BN), lambda: (0, 0)),
        pl.BlockSpec((BN, f_in), lambda: (0, 0)),
    ]
    for (w, b) in params["layers"]:
        inputs += [w, b]
        in_specs += [
            pl.BlockSpec(w.shape, lambda: (0, 0)),
            pl.BlockSpec(b.shape, lambda: (0, 0)),
        ]
    inputs += [pool, w_mlp_p, b_mlp_p]
    in_specs += [
        pl.BlockSpec((B, BN), lambda: (0, 0)),
        pl.BlockSpec((H, O_PAD), lambda: (0, 0)),
        pl.BlockSpec((1, O_PAD), lambda: (0, 0)),
    ]

    # advisory cost estimate so XLA schedules the tiny custom call sensibly
    flops = 0
    fin = f_in
    for (w, _) in params["layers"]:
        fout = int(w.shape[1])
        flops += 2 * BN * fin * fout + 2 * BN * BN * fout
        fin = fout
    flops += 2 * B * BN * H + 2 * B * H * O_PAD
    bytes_accessed = 4 * (
        BN * BN + BN * f_in + B * BN + H * O_PAD + O_PAD + B * O_PAD
        + sum(int(w.size) + int(b.size) for (w, b) in params["layers"])
    )

    # NOTE: single grid step on one TensorCore; at these sizes splitting B across
    # v7x's 2 TCs is not worth a second launch. Everything fits in <100 KB VMEM.
    out_pad = pl.pallas_call(
        make_fused_gcn_kernel(n_conv),
        out_shape=jax.ShapeDtypeStruct((B, O_PAD), jnp.float32),
        grid_spec=pl.GridSpec(
            grid=(),
            in_specs=in_specs,
            out_specs=pl.BlockSpec((B, O_PAD), lambda: (0, 0)),
        ),
        cost_estimate=pl.CostEstimate(
            flops=flops, transcendentals=B * O_PAD, bytes_accessed=bytes_accessed
        ),
        compiler_params=pltpu.CompilerParams(vmem_limit_bytes=8 * 1024 * 1024),
    )(*inputs)

    return out_pad[:, :O]


# pure-JAX reference (same math) for a correctness check
def gcn_forward_ref(a_hat, h, params):
    for (w, b) in params["layers"]:
        h = jax.nn.relu(jnp.einsum("bij,bjf->bif", a_hat, h @ w) + b)
    w_mlp, b_mlp = params["mlp"]
    hg = jnp.mean(h, axis=1)
    logits = hg @ w_mlp + b_mlp
    return jax.nn.log_softmax(logits, axis=0)


# ------------------------------ setup / main ---------------------------------

def build_normalized_adjacency(key, B, N):
    """Random symmetric graph + self loops, symmetric normalization (DGL norm='both')."""
    a = jax.random.bernoulli(key, p=0.3, shape=(B, N, N)).astype(jnp.float32)
    a = jnp.maximum(a, jnp.swapaxes(a, 1, 2))                # symmetric
    a = a * (1.0 - jnp.eye(N)[None]) + jnp.eye(N)[None]      # self loops
    deg = jnp.sum(a, axis=-1)                                # (B, N)
    d_inv_sqrt = 1.0 / jnp.sqrt(deg)
    return a * d_inv_sqrt[:, :, None] * d_inv_sqrt[:, None, :]


def init_params(key, input_dim, hidden_dim, output_dim, n_layers):
    dims = [input_dim] + [hidden_dim] * (n_layers - 1)       # n_layers-1 GraphConv layers
    keys = jax.random.split(key, len(dims))
    layers = []
    for i in range(len(dims) - 1):
        fin, fout = dims[i], dims[i + 1]
        w = jax.random.normal(keys[i], (fin, fout), jnp.float32) / jnp.sqrt(fin)
        b = 0.01 * jax.random.normal(jax.random.fold_in(keys[i], 1), (1, fout), jnp.float32)
        layers.append((w, b))
    w_mlp = jax.random.normal(keys[-1], (hidden_dim, output_dim), jnp.float32) / jnp.sqrt(hidden_dim)
    b_mlp = 0.01 * jax.random.normal(jax.random.fold_in(keys[-1], 1), (1, output_dim), jnp.float32)
    return {"layers": layers, "mlp": (w_mlp, b_mlp)}


if __name__ == "__main__":
    net_params = dict(input_dim=8, hidden_dim=32, output_dim=4, n_layers=3, readout="mean")
    B, N = 2, 16                                             # 2 graphs, 16 nodes each

    root = jax.random.PRNGKey(0)
    k_adj, k_feat, k_par = jax.random.split(root, 3)

    a_hat = build_normalized_adjacency(k_adj, B, N)
    h0 = jax.random.normal(k_feat, (B, N, net_params["input_dim"]), jnp.float32)
    params = init_params(k_par, net_params["input_dim"], net_params["hidden_dim"],
                         net_params["output_dim"], net_params["n_layers"])

    fwd = jax.jit(gcn_forward)
    out = jax.block_until_ready(fwd(a_hat, h0, params))

    ref = gcn_forward_ref(a_hat, h0, params)
    assert out.shape == (B, net_params["output_dim"])
    assert jnp.allclose(out, ref, atol=1e-4, rtol=1e-4), "Pallas output mismatch vs reference"

    print("KERNEL_OK")
</pallas_src>

<mosaic_0001>
module attributes {stable_mosaic.version = 11 : i64} {
  func.func @kernel(%arg0: memref<32x32xf32, #tpu.memory_space<vmem>>, %arg1: memref<32x8xf32, #tpu.memory_space<vmem>>, %arg2: memref<8x32xf32, #tpu.memory_space<vmem>>, %arg3: memref<1x32xf32, #tpu.memory_space<vmem>>, %arg4: memref<32x32xf32, #tpu.memory_space<vmem>>, %arg5: memref<1x32xf32, #tpu.memory_space<vmem>>, %arg6: memref<2x32xf32, #tpu.memory_space<vmem>>, %arg7: memref<32x128xf32, #tpu.memory_space<vmem>>, %arg8: memref<1x128xf32, #tpu.memory_space<vmem>>, %arg9: memref<2x128xf32, #tpu.memory_space<vmem>>) attributes {dimension_semantics = [], scalar_prefetch = 0 : i64, scratch_operands = 0 : i64, tpu.core_type = #tpu.core_type<tc>} {
    %c0 = arith.constant 0 : index
    %c0_0 = arith.constant 0 : index
    %0 = vector.load %arg0[%c0, %c0_0] : memref<32x32xf32, #tpu.memory_space<vmem>>, vector<32x32xf32>
    %c0_1 = arith.constant 0 : index
    %c0_2 = arith.constant 0 : index
    %1 = vector.load %arg1[%c0_1, %c0_2] : memref<32x8xf32, #tpu.memory_space<vmem>>, vector<32x8xf32>
    %c0_3 = arith.constant 0 : index
    %c0_4 = arith.constant 0 : index
    %2 = vector.load %arg2[%c0_3, %c0_4] : memref<8x32xf32, #tpu.memory_space<vmem>>, vector<8x32xf32>
    %c0_5 = arith.constant 0 : index
    %c0_6 = arith.constant 0 : index
    %3 = vector.load %arg3[%c0_5, %c0_6] : memref<1x32xf32, #tpu.memory_space<vmem>>, vector<1x32xf32>
    %cst = arith.constant dense<0.000000e+00> : vector<32x32xf32>
    %4 = tpu.matmul %1, %2, %cst {dimension_numbers = #tpu.dot_dimension_numbers<[1], [0], [0], [1], [0, 0, 1, 1], [], []>} : vector<32x8xf32>, vector<8x32xf32>, vector<32x32xf32> -> vector<32x32xf32>
    %cst_7 = arith.constant dense<0.000000e+00> : vector<32x32xf32>
    %5 = tpu.matmul %0, %4, %cst_7 {dimension_numbers = #tpu.dot_dimension_numbers<[1], [0], [0], [1], [0, 0, 1, 1], [], []>} : vector<32x32xf32>, vector<32x32xf32>, vector<32x32xf32> -> vector<32x32xf32>
    %6 = vector.broadcast %3 : vector<1x32xf32> to vector<32x32xf32>
    %7 = arith.addf %5, %6 : vector<32x32xf32>
    %cst_8 = arith.constant 0.000000e+00 : f32
    %8 = vector.broadcast %cst_8 : f32 to vector<32x32xf32>
    %9 = arith.maximumf %7, %8 : vector<32x32xf32>
    %c0_9 = arith.constant 0 : index
    %c0_10 = arith.constant 0 : index
    %10 = vector.load %arg4[%c0_9, %c0_10] : memref<32x32xf32, #tpu.memory_space<vmem>>, vector<32x32xf32>
    %c0_11 = arith.constant 0 : index
    %c0_12 = arith.constant 0 : index
    %11 = vector.load %arg5[%c0_11, %c0_12] : memref<1x32xf32, #tpu.memory_space<vmem>>, vector<1x32xf32>
    %cst_13 = arith.constant dense<0.000000e+00> : vector<32x32xf32>
    %12 = tpu.matmul %9, %10, %cst_13 {dimension_numbers = #tpu.dot_dimension_numbers<[1], [0], [0], [1], [0, 0, 1, 1], [], []>} : vector<32x32xf32>, vector<32x32xf32>, vector<32x32xf32> -> vector<32x32xf32>
    %cst_14 = arith.constant dense<0.000000e+00> : vector<32x32xf32>
    %13 = tpu.matmul %0, %12, %cst_14 {dimension_numbers = #tpu.dot_dimension_numbers<[1], [0], [0], [1], [0, 0, 1, 1], [], []>} : vector<32x32xf32>, vector<32x32xf32>, vector<32x32xf32> -> vector<32x32xf32>
    %14 = vector.broadcast %11 : vector<1x32xf32> to vector<32x32xf32>
    %15 = arith.addf %13, %14 : vector<32x32xf32>
    %cst_15 = arith.constant 0.000000e+00 : f32
    %16 = vector.broadcast %cst_15 : f32 to vector<32x32xf32>
    %17 = arith.maximumf %15, %16 : vector<32x32xf32>
    %c0_16 = arith.constant 0 : index
    %c0_17 = arith.constant 0 : index
    %18 = vector.load %arg6[%c0_16, %c0_17] : memref<2x32xf32, #tpu.memory_space<vmem>>, vector<2x32xf32>
    %c0_18 = arith.constant 0 : index
    %c0_19 = arith.constant 0 : index
    %19 = vector.load %arg7[%c0_18, %c0_19] : memref<32x128xf32, #tpu.memory_space<vmem>>, vector<32x128xf32>
    %c0_20 = arith.constant 0 : index
    %c0_21 = arith.constant 0 : index
    %20 = vector.load %arg8[%c0_20, %c0_21] : memref<1x128xf32, #tpu.memory_space<vmem>>, vector<1x128xf32>
    %cst_22 = arith.constant dense<0.000000e+00> : vector<2x32xf32>
    %21 = tpu.matmul %18, %17, %cst_22 {dimension_numbers = #tpu.dot_dimension_numbers<[1], [0], [0], [1], [0, 0, 1, 1], [], []>} : vector<2x32xf32>, vector<32x32xf32>, vector<2x32xf32> -> vector<2x32xf32>
    %cst_23 = arith.constant dense<0.000000e+00> : vector<2x128xf32>
    %22 = tpu.matmul %21, %19, %cst_23 {dimension_numbers = #tpu.dot_dimension_numbers<[1], [0], [0], [1], [0, 0, 1, 1], [], []>} : vector<2x32xf32>, vector<32x128xf32>, vector<2x128xf32> -> vector<2x128xf32>
    %23 = vector.broadcast %20 : vector<1x128xf32> to vector<2x128xf32>
    %24 = arith.addf %22, %23 : vector<2x128xf32>
    %cst_24 = arith.constant dense<0xFF800000> : vector<128xf32>
    %25 = vector.multi_reduction <maximumf>, %24, %cst_24 [0] : vector<2x128xf32> to vector<128xf32>
    %26 = vector.shape_cast %25 : vector<128xf32> to vector<1x128xf32>
    %27 = vector.broadcast %26 : vector<1x128xf32> to vector<2x128xf32>
    %28 = arith.subf %24, %27 : vector<2x128xf32>
    %29 = math.exp %28 : vector<2x128xf32>
    %cst_25 = arith.constant dense<0.000000e+00> : vector<128xf32>
    %30 = vector.multi_reduction <add>, %29, %cst_25 [0] : vector<2x128xf32> to vector<128xf32>
    %31 = vector.shape_cast %30 : vector<128xf32> to vector<1x128xf32>
    %32 = math.log %31 : vector<1x128xf32>
    %33 = arith.addf %32, %26 : vector<1x128xf32>
    %34 = vector.broadcast %33 : vector<1x128xf32> to vector<2x128xf32>
    %35 = arith.subf %24, %34 : vector<2x128xf32>
    %c0_26 = arith.constant 0 : index
    %c0_27 = arith.constant 0 : index
    %36 = vector.load %arg9[%c0_26, %c0_27] : memref<2x128xf32, #tpu.memory_space<vmem>>, vector<2x128xf32>
    tpu.vector_store %arg9[%c0_26, %c0_27], %35 {strides = array<i32>} : memref<2x128xf32, #tpu.memory_space<vmem>>, vector<2x128xf32>,
    return
  }
}

</mosaic_0001>

<bundles_post_ra>
// kernel: gcn_forward.1
= control target key start
LH: loop header
LB: loop body
LE: loop exit
PB: predicated region body
PF: predicated region fallthrough
CT: control target
= control target key end

     0   :  { %vm43_vm0 = vcmask 64512   ;;  %s493_s0 = inlined_call_operand.vmem [shape: f32[32,32], index: 0, kind: input, shape index: {}]   ;;  %s494_s1 = inlined_call_operand.vmem [shape: f32[32,8], index: 1, kind: input, shape index: {}]   ;;  %s495_s2 = inlined_call_operand.vmem [shape: f32[8,32], index: 2, kind: input, shape index: {}]   ;;  %s496_s3 = inlined_call_operand.vmem [shape: f32[1,32], index: 3, kind: input, shape index: {}]   ;;  %s497_s4 = inlined_call_operand.vmem [shape: f32[32,32], index: 4, kind: input, shape index: {}]   ;;  %s498_s5 = inlined_call_operand.vmem [shape: f32[1,32], index: 5, kind: input, shape index: {}]   ;;  %s499_s6 = inlined_call_operand.vmem [shape: f32[2,32], index: 6, kind: input, shape index: {}]   ;;  %s500_s7 = inlined_call_operand.vmem [shape: f32[32,128], index: 7, kind: input, shape index: {}]   ;;  %s501_s8 = inlined_call_operand.vmem [shape: f32[1,128], index: 8, kind: input, shape index: {}]   ;;  %s502_s9 = inlined_call_operand.hbm [shape: f32[2,128], index: 9, kind: output, shape index: {}]  }
   0x1   :  { %v41_v0 = vld [vmem:[%s495_s2] sm:$0xff] }
   0x2   :  { %v37_v1 = vld [vmem:[%s494_s1] sm:$0xff]  ;;  %71 = vmatpush.msra.mxu0 %v41_v0 }
   0x3   :  { %310 = vmatmul.msk.f32.vlgmr.msra.gmra.mxu0 %vm43_vm0, %v37_v1 }
   0x4   :  { %14 = vsyncpa [#allocation3], 0  ;;  %v38_v2 = vld [vmem:[%s494_s1 + $0x8] sm:$0xff]  ;;  %v39_v3 = vld [vmem:[%s494_s1 + $0x10] sm:$0xff]  ;;  %vm88_vm1 = vcmask 261120   ;;  %vm271_vm2 = vcmask 1041408  }
   0x5   :  { %v40_v4 = vld [vmem:[%s494_s1 + $0x18] sm:$0xff]  ;;  %v33_v10 = vld [vmem:[%s493_s0] sm:$0xff]  ;;  %v34_v11 = vld [vmem:[%s493_s0 + $0x8] sm:$0xff]  ;;  %s301_s23 = sshll.u32 %s502_s9, 4  ;;  %s302_s23 = int_to_ptr.hbm [resolvable:$true] %s301_s23 }
   0x6   :  { %v137_v9 = vld [vmem:[%s497_s4 + $0x18] sm:$0xff]  ;;  %v35_v12 = vld [vmem:[%s493_s0 + $0x10] sm:$0xff]  ;;  %v135_v15 = vld [vmem:[%s497_s4 + $0x8] sm:$0xff] }
   0x7   :  { %163 = vmatpush.msra.mxu2 %v137_v9  ;;  %v36_v13 = vld [vmem:[%s493_s0 + $0x18] sm:$0xff]  ;;  %v136_v14 = vld [vmem:[%s497_s4 + $0x10] sm:$0xff]  ;;  %v134_v16 = vld [vmem:[%s497_s4] sm:$0xff] }
   0x8   :  { %v329_v17 = vld [vmem:[%s496_s3] ss:$0 sm:$0xff]  ;;  %v220_v35 = vld [vmem:[%s500_s7 + $0x18] sm:$0xff]  ;;  %v219_v36 = vld [vmem:[%s500_s7 + $0x10] sm:$0xff] }
   0x9   :  { %164 = vmatpush.msra.mxu2 %v136_v14  ;;  %v218_v37 = vld [vmem:[%s500_s7 + $0x8] sm:$0xff]  ;;  %v330_v40 = vld [vmem:[%s498_s5] ss:$0 sm:$0xff] }
   0xa   :  { %v216_v50 = vld [vmem:[%s499_s6] sm:$0x3]  ;;  %s362_s6 = smov [#allocation2]  }
   0xb   :  { %311 = vmatmul.msk.f32.gmra.mxu0 %vm43_vm0, %v38_v2  ;;  %165 = vmatpush.msra.mxu2 %v135_v15  ;;  %v217_v51 = vld [vmem:[%s500_s7] sm:$0xff]  ;;  %s299_s7 = sshll.u32 %s362_s6, 4  ;;  %s300_s7 = int_to_ptr.vmem [resolvable:$true] %s299_s7 }
   0xc   :  { %v331_v53 = vld [vmem:[%s501_s8] ss:$0 sm:$0xff] }
   0xd   :  { %166 = vmatpush.msra.mxu2 %v134_v16 }
  0x13   :  { %312 = vmatmul.msk.f32.gmra.mxu0 %vm43_vm0, %v39_v3 }
  0x1b   :  { %313 = vmatmul.msk.f32.gmra.mxu0 %vm43_vm0, %v40_v4 }
  0x80   :  { %v73_v5 = vpop.f32.mrf.mxu0 }
  0x88   :  { %v76_v6 = vpop.f32.mrf.mxu0 }
  0x90   :  { %v79_v7 = vpop.f32.mrf.mxu0 }
  0x98   :  { %v82_v8 = vpop.f32.mrf.mxu0 }
  0x99   :  { %113 = vmatpush.msra.mxu1 %v82_v8 }
  0x9b   :  { %114 = vmatpush.msra.mxu1 %v79_v7 }
  0x9d   :  { %115 = vmatpush.msra.mxu1 %v76_v6 }
  0x9f   :  { %116 = vmatpush.msra.mxu1 %v73_v5 }
  0xa0   :  { %314 = vmatmul.msk.f32.vlgmr.msra.gmra.mxu1 %vm88_vm1, %v33_v10 }
  0xa1   :  { %263 = vmatpush.msrb.mxu1 %v220_v35 }
  0xa3   :  { %264 = vmatpush.msrb.mxu1 %v219_v36 }
  0xa5   :  { %265 = vmatpush.msrb.mxu1 %v218_v37 }
  0xa7   :  { %266 = vmatpush.msrb.mxu1 %v217_v51 }
  0xa8   :  { %315 = vmatmul.msk.f32.gmra.mxu1 %vm88_vm1, %v34_v11 }
  0xb0   :  { %316 = vmatmul.msk.f32.gmra.mxu1 %vm88_vm1, %v35_v12 }
  0xb8   :  { %317 = vmatmul.msk.f32.gmra.mxu1 %vm88_vm1, %v36_v13 }
 0x11d   :  { %v118_v18 = vpop.f32.mrf.mxu1 }
 0x11e   :  { %v119_v19 = vadd.f32 %v329_v17, %v118_v18 }
 0x120   :  { %v130_v20 = vmax.f32 %v119_v19, 0.0 }
 0x122   :  { %318 = vmatmul.msk.f32.vlgmr.msra.gmra.mxu2 %vm88_vm1, %v130_v20 }
 0x125   :  { %v121_v21 = vpop.f32.mrf.mxu1 }
 0x126   :  { %v122_v22 = vadd.f32 %v329_v17, %v121_v21 }
 0x128   :  { %v131_v23 = vmax.f32 %v122_v22, 0.0 }
 0x12a   :  { %319 = vmatmul.msk.f32.gmra.mxu2 %vm88_vm1, %v131_v23 }
 0x12d   :  { %v124_v24 = vpop.f32.mrf.mxu1 }
 0x12e   :  { %v125_v25 = vadd.f32 %v329_v17, %v124_v24 }
 0x130   :  { %v132_v26 = vmax.f32 %v125_v25, 0.0 }
 0x132   :  { %320 = vmatmul.msk.f32.gmra.mxu2 %vm88_vm1, %v132_v26 }
 0x135   :  { %v127_v27 = vpop.f32.mrf.mxu1 }
 0x136   :  { %v128_v28 = vadd.f32 %v329_v17, %v127_v27 }
 0x138   :  { %v133_v29 = vmax.f32 %v128_v28, 0.0 }
 0x13a   :  { %321 = vmatmul.msk.f32.gmra.mxu2 %vm88_vm1, %v133_v29 }
 0x1a5   :  { %v168_v30 = vpop.f32.mrf.mxu2 }
 0x1ad   :  { %v171_v31 = vpop.f32.mrf.mxu2 }
 0x1b5   :  { %v174_v32 = vpop.f32.mrf.mxu2 }
 0x1bd   :  { %v177_v33 = vpop.f32.mrf.mxu2 }
 0x1be   :  { %195 = vmatpush.msra.mxu3 %v177_v33 }
 0x1c0   :  { %196 = vmatpush.msra.mxu3 %v174_v32 }
 0x1c2   :  { %197 = vmatpush.msra.mxu3 %v171_v31 }
 0x1c4   :  { %198 = vmatpush.msra.mxu3 %v168_v30 }
 0x1c5   :  { %322 = vmatmul.msk.f32.vlgmr.msra.gmra.mxu3 %vm88_vm1, %v33_v10 }
 0x1cd   :  { %323 = vmatmul.msk.f32.gmra.mxu3 %vm88_vm1, %v34_v11 }
 0x1d5   :  { %324 = vmatmul.msk.f32.gmra.mxu3 %vm88_vm1, %v35_v12 }
 0x1dd   :  { %325 = vmatmul.msk.f32.gmra.mxu3 %vm88_vm1, %v36_v13 }
 0x248   :  { %v200_v34 = vpop.f32.mrf.mxu3 }
 0x249   :  { %v201_v46 = vadd.f32 %v330_v40, %v200_v34 }
 0x24b   :  { %v212_v49 = vmax.f32 %v201_v46, 0.0 }
 0x250   :  { %v203_v38 = vpop.f32.mrf.mxu3 }
 0x251   :  { %v204_v44 = vadd.f32 %v330_v40, %v203_v38 }
 0x253   :  { %v213_v48 = vmax.f32 %v204_v44, 0.0 }
 0x258   :  { %v206_v39 = vpop.f32.mrf.mxu3 }
 0x259   :  { %v207_v42 = vadd.f32 %v330_v40, %v206_v39 }
 0x25b   :  { %v214_v47 = vmax.f32 %v207_v42, 0.0 }
 0x260   :  { %v209_v41 = vpop.f32.mrf.mxu3 }
 0x261   :  { %v210_v43 = vadd.f32 %v330_v40, %v209_v41 }
 0x263   :  { %v215_v45 = vmax.f32 %v210_v43, 0.0 }
 0x265   :  { %237 = vmatpush.msrb.mxu0 %v215_v45 }
 0x267   :  { %238 = vmatpush.msrb.mxu0 %v214_v47 }
 0x269   :  { %239 = vmatpush.msrb.mxu0 %v213_v48 }
 0x26b   :  { %240 = vmatpush.msrb.mxu0 %v212_v49 }
 0x26c   :  { %326 = vmatmul.msk.f32.vlgmr.msrb.gmra.mxu0 %vm88_vm1, %v216_v50 }
 0x2e9   :  { %v242_v52 = vpop.f32.mrf.mxu0 }
 0x2ea   :  { %327 = vmatmul.msk.f32.vlgmr.msrb.gmra.mxu1 %vm88_vm1, %v242_v52 }
 0x367   :  { %v268_v54 = vpop.f32.mrf.mxu1 }
 0x368   :  { %v269_v55 = vadd.f32 %v331_v53, %v268_v54 }
 0x36a   :  { %v272_v56 = vsel %vm271_vm2, %v269_v55, -inf }
 0x36b   :  { %v273_v57 = vrot.slane %v272_v56, 4 }
 0x36d   :  { %v274_v58 = vmax.f32 %v272_v56, %v273_v57 }
 0x36f   :  { %v275_v59 = vrot.slane %v274_v58, 2 }
 0x371   :  { %v276_v60 = vmax.f32 %v274_v58, %v275_v59 }
 0x373   :  { %v277_v61 = vrot.slane %v276_v60, 1 }
 0x375   :  { %v278_v62 = vmax.f32 %v276_v60, %v277_v61 }
 0x377   :  { %v279_v63 = vsub.f32 %v269_v55, %v278_v62 }
 0x379   :  { %v280_v0 = vmul.f32 1.442695, %v279_v63 }
 0x37b   :  { %332 = vpow2.f32 %v280_v0 }
 0x381   :  { %v333_v1 = vpop.eup %332 }
 0x382   :  { %v282_v2 = vsel %vm271_vm2, %v333_v1, 0.0 }
 0x383   :  { %v283_v3 = vrot.slane %v282_v2, 4 }
 0x385   :  { %v284_v4 = vadd.f32 %v283_v3, %v282_v2 }
 0x387   :  { %v285_v5 = vrot.slane %v284_v4, 2 }
 0x389   :  { %v286_v6 = vadd.f32 %v285_v5, %v284_v4 }
 0x38b   :  { %v287_v7 = vrot.slane %v286_v6, 1 }
 0x38d   :  { %v288_v8 = vadd.f32 %v287_v7, %v286_v6 }
 0x38f   :  { %334 = vlog2.f32 %v288_v8 }
 0x395   :  { %v335_v9 = vpop.eup %334 }
 0x396   :  { %v290_v10 = vmul.f32 0.6931472, %v335_v9 }
 0x398   :  { %v291_v11 = vadd.f32 %v290_v10, %v278_v62 }
 0x39a   :  { %v292_v12 = vsub.f32 %v269_v55, %v291_v11 }
 0x39c   :  { %293 = vst [vmem:[#allocation2] sm:$0x3] %v292_v12 }
 0x39d   :  { %304 = dma.vmem_to_hbm [thread:$0]  %s300_s7, 32, %s302_s23, [#allocation3]  }
 0x39e   :  { %360 = dma.done.wait [#allocation3], 32  }
 0x39f   :  { %361 = vsyncadd [#allocation3], 4294967264 }
 0x3a0   :  { %309 = vsyncpa [#allocation3], 1 }

</bundles_post_ra>
